<compile_context>
chip_gen: v6e
topology: v6e:2x2x1
jax: 0.10.0
libtpu: 0.0.40
codegen_flags: <defaults>
</compile_context>

<pallas_src>
import math

import jax
import jax.numpy as jnp
from jax import lax
from jax.experimental import pallas as pl
from jax.experimental.pallas import tpu as pltpu

EMBED_DIM = 48
NUM_ATTN_HEADS = 3          # required by the .split(EMBED_DIM) -> (q, k, v) unpack
HEAD_DIM = EMBED_DIM // NUM_ATTN_HEADS
STD = 0.02
DROPOUT_PROB = 0.0          # identity dropout

PART = 128                  # lane stride of each of Q/K/V in the packed slab
E_PAD = 128                 # lane-dense output feature dim (store lever only)

assert NUM_ATTN_HEADS == 3, "module's .split(EMBED_DIM) unpack requires 3 heads"


def mha_kernel(x_ref, wqkv_ref, bqkv_ref, wo_ref, bo_ref, o_ref):
    """One grid step == one batch tile (block_b batch elements).

    x_ref    : (block_b, S, E)        f32, UNPADDED input (E == full array dim)
    wqkv_ref : (E, 3*PART)            bf16 packed QKV weights (x@W form);
                                      cols [p*PART + h*Dh + d] for part p, head h
    bqkv_ref : (1, 3*PART)            f32 packed QKV bias (same layout, zero-padded)
    wo_ref   : (H, Dh, E_PAD)         bf16 per-head output-projection weights
    bo_ref   : (1, E_PAD)             f32 output-projection bias, padded
    o_ref    : (block_b, S, E_PAD)    f32 lane-dense output
    """
    bt, s_len, e = x_ref.shape
    ep = o_ref.shape[-1]
    rows = bt * s_len

    # Fat row matrix; bf16 operands -> native bf16 MXU path, f32 accumulation.
    xf = x_ref[...].reshape(rows, e).astype(jnp.bfloat16)

    # Single fused QKV projection: (rows, 48) @ (48, 384).
    qkv = jnp.dot(xf, wqkv_ref[...], preferred_element_type=jnp.float32)
    qkv = qkv + bqkv_ref[0]                                   # (rows, 3*PART) f32

    # Causal additive mask (finite large-negative, not -inf).
    row = lax.broadcasted_iota(jnp.int32, (s_len, s_len), 0)
    col = lax.broadcasted_iota(jnp.int32, (s_len, s_len), 1)
    mask_bias = jnp.where(col <= row, 0.0, -1e30).astype(jnp.float32)  # (S, S)

    scale = 1.0 / math.sqrt(HEAD_DIM)                         # unpadded head dim

    # Output accumulator with the output-projection bias folded in.
    acc = jnp.zeros((rows, ep), jnp.float32) + bo_ref[0]

    for h in range(NUM_ATTN_HEADS):                           # static unroll, H == 3
        base = h * HEAD_DIM
        q = qkv[:, 0 * PART + base: 0 * PART + base + HEAD_DIM].reshape(bt, s_len, HEAD_DIM)
        k = qkv[:, 1 * PART + base: 1 * PART + base + HEAD_DIM].reshape(bt, s_len, HEAD_DIM)
        v = qkv[:, 2 * PART + base: 2 * PART + base + HEAD_DIM].reshape(bt, s_len, HEAD_DIM)

        # Scores: batched contraction over the head dim, no explicit k.T.
        s = jnp.einsum("bqd,bkd->bqk", q, k,
                       preferred_element_type=jnp.float32) * scale      # (bt, S, S)
        s = s + mask_bias[None, :, :]

        # Hand-rolled softmax: exp on EUP, approximate reciprocal on EUP.
        m = jnp.max(s, axis=-1, keepdims=True)
        ex = jnp.exp(s - m)
        denom = jnp.sum(ex, axis=-1, keepdims=True)
        p = ex * pl.reciprocal(denom, approx=True)
        # (attn_dropout is identity at DROPOUT_PROB == 0.0)

        # Attention output: (bt,S,S) @ (bt,S,Dh) -> (bt,S,Dh).
        ho = jnp.einsum("bqk,bkd->bqd", p, v,
                        preferred_element_type=jnp.float32)

        # Head merge folded into the output projection (K = Dh = 16, no concat).
        acc = acc + jnp.dot(ho.reshape(rows, HEAD_DIM).astype(jnp.bfloat16),
                            wo_ref[h], preferred_element_type=jnp.float32)

    # Lane-dense (128-wide) store.  (resid_dropout is identity.)
    o_ref[...] = acc.reshape(bt, s_len, ep).astype(o_ref.dtype)


def pack_params(w_qkv, b_qkv, w_o, b_o):
    """One-time (parameter-load-time) weight reformatting -- NOT per forward.

    w_qkv: (3E, E) torch layout; b_qkv: (3E,); w_o: (E, E) torch layout; b_o: (E,).
    """
    f32, bf16 = jnp.float32, jnp.bfloat16
    E, H, Dh = EMBED_DIM, NUM_ATTN_HEADS, HEAD_DIM

    # x @ W^T form: (E, 3E); column f = part*E + head*Dh + d.  Pack each part
    # into its own 128-lane band (48 real + 80 zero lanes).
    wqkv_t = jnp.asarray(w_qkv, f32).T.reshape(E, 3, E)                 # (E, 3, E)
    wqkv_packed = jnp.zeros((E, 3, PART), f32).at[:, :, :E].set(wqkv_t)
    wqkv_packed = wqkv_packed.reshape(E, 3 * PART).astype(bf16)        # (48, 384) bf16

    bqkv = jnp.asarray(b_qkv, f32).reshape(3, E)
    bqkv_packed = jnp.zeros((3, PART), f32).at[:, :E].set(bqkv).reshape(1, 3 * PART)

    # out = merged @ Wo^T + bo; head h owns rows h*Dh:(h+1)*Dh of Wo^T.
    wo_heads = jnp.asarray(w_o, f32).T.reshape(H, Dh, E)                # (H, Dh, E)
    wo_packed = jnp.zeros((H, Dh, E_PAD), f32).at[:, :, :E].set(wo_heads).astype(bf16)

    bo_packed = jnp.zeros((1, E_PAD), f32).at[0, :E].set(jnp.asarray(b_o, f32))
    return wqkv_packed, bqkv_packed, wo_packed, bo_packed


def multi_head_attention(x, wqkv_packed, bqkv_packed, wo_packed, bo_packed,
                         *, block_b=None):
    """x: (B, S, 48) float32; packed weights from pack_params()."""
    B, S, E = x.shape
    assert E == EMBED_DIM

    # Single grid step by default: at small B, splitting across TensorCores only
    # duplicates the weight DMA.  Callers may pass a divisor of B to split.
    if block_b is None:
        block_b = B
    assert B % block_b == 0
    nb = B // block_b

    out_pad = pl.pallas_call(
        mha_kernel,
        out_shape=jax.ShapeDtypeStruct((B, S, E_PAD), x.dtype),
        grid_spec=pltpu.PrefetchScalarGridSpec(
            num_scalar_prefetch=0,
            grid=(nb,),
            in_specs=[
                pl.BlockSpec((block_b, S, E), lambda i: (i, 0, 0)),          # x (unpadded)
                pl.BlockSpec((E, 3 * PART), lambda i: (0, 0)),               # W_qkv packed
                pl.BlockSpec((1, 3 * PART), lambda i: (0, 0)),               # b_qkv packed
                pl.BlockSpec((NUM_ATTN_HEADS, HEAD_DIM, E_PAD),
                             lambda i: (0, 0, 0)),                           # W_o per head
                pl.BlockSpec((1, E_PAD), lambda i: (0, 0)),                  # b_o
            ],
            out_specs=pl.BlockSpec((block_b, S, E_PAD), lambda i: (i, 0, 0)),
        ),
        compiler_params=pltpu.CompilerParams(
            dimension_semantics=("parallel",) if nb > 1 else ("arbitrary",)),
    )(x, wqkv_packed, bqkv_packed, wo_packed, bo_packed)

    # Slice the lane padding back off.
    return out_pad[:, :, :E]


def reference_mha(x, w_qkv, b_qkv, w_o, b_o):
    """Pure-JAX f32 replica of the PyTorch forward (eval mode) for verification."""
    B, S, E = x.shape
    qkv = jnp.einsum("bse,fe->bsf", x, w_qkv) + b_qkv              # (B, S, 3E)
    q, k, v = jnp.split(qkv, 3, axis=-1)

    def split_heads(t):
        return t.reshape(B, S, NUM_ATTN_HEADS, HEAD_DIM).transpose(0, 2, 1, 3)

    q, k, v = split_heads(q), split_heads(k), split_heads(v)       # (B, H, S, Dh)
    scores = jnp.einsum("bhqd,bhkd->bhqk", q, k) / math.sqrt(HEAD_DIM)
    mask = jnp.tril(jnp.ones((S, S), dtype=bool))
    scores = jnp.where(mask[None, None], scores, -jnp.inf)
    attn = jax.nn.softmax(scores, axis=-1)
    out = jnp.einsum("bhqk,bhkd->bhqd", attn, v)                   # (B, H, S, Dh)
    out = out.transpose(0, 2, 1, 3).reshape(B, S, E)
    return jnp.einsum("bse,fe->bsf", out, w_o) + b_o


if __name__ == "__main__":
    B, S, E = 2, 8, EMBED_DIM

    key = jax.random.PRNGKey(0)
    kx, kw1, kw2 = jax.random.split(key, 3)

    # Deterministic parameter init mirroring the module's __init__:
    #   normal_(weight, std=STD); zeros_(bias)
    x = jax.random.normal(kx, (B, S, E), dtype=jnp.float32)
    w_qkv = STD * jax.random.normal(kw1, (NUM_ATTN_HEADS * E, E), dtype=jnp.float32)
    b_qkv = jnp.zeros((NUM_ATTN_HEADS * E,), dtype=jnp.float32)
    w_o = STD * jax.random.normal(kw2, (E, E), dtype=jnp.float32)
    b_o = jnp.zeros((E,), dtype=jnp.float32)

    # Weight reformatting is hoisted out of the per-call path (done once here).
    packed = pack_params(w_qkv, b_qkv, w_o, b_o)
    packed = tuple(jax.block_until_ready(p) for p in packed)

    fwd = jax.jit(multi_head_attention)
    out = jax.block_until_ready(fwd(x, *packed))

    ref = jax.block_until_ready(reference_mha(x, w_qkv, b_qkv, w_o, b_o))
    assert out.shape == (B, S, E)
    # Tolerance accounts for bf16-compressed weights (f32 accumulation) and the
    # approximate EUP reciprocal in the hand-rolled softmax; still far tighter
    # than any structural/layout error would produce.
    assert jnp.allclose(out, ref, atol=2e-3, rtol=2e-2), "mismatch vs reference"

    print("KERNEL_OK")
</pallas_src>

<mosaic_0001>
module attributes {stable_mosaic.version = 11 : i64} {
  func.func @mha_kernel(%arg0: i32, %arg1: memref<2x8x48xf32, #tpu.memory_space<vmem>>, %arg2: memref<48x384xbf16, #tpu.memory_space<vmem>>, %arg3: memref<1x384xf32, #tpu.memory_space<vmem>>, %arg4: memref<3x16x128xbf16, #tpu.memory_space<vmem>>, %arg5: memref<1x128xf32, #tpu.memory_space<vmem>>, %arg6: memref<2x8x128xf32, #tpu.memory_space<vmem>>) attributes {dimension_semantics = [#tpu.dimension_semantics<arbitrary>], iteration_bounds = array<i64: 1>, scalar_prefetch = 0 : i64, scratch_operands = 0 : i64, tpu.core_type = #tpu.core_type<tc>, window_params = [{transform_indices = @transform_0, window_bounds = array<i64: 2, 8, 48>}, {pipeline_mode = #tpu.pipeline_mode<synchronous>, transform_indices = @transform_1, window_bounds = array<i64: 48, 384>}, {pipeline_mode = #tpu.pipeline_mode<synchronous>, transform_indices = @transform_2, window_bounds = array<i64: 1, 384>}, {pipeline_mode = #tpu.pipeline_mode<synchronous>, transform_indices = @transform_3, window_bounds = array<i64: 3, 16, 128>}, {pipeline_mode = #tpu.pipeline_mode<synchronous>, transform_indices = @transform_4, window_bounds = array<i64: 1, 128>}, {transform_indices = @transform_5, window_bounds = array<i64: 2, 8, 128>}]} {
    %c0 = arith.constant 0 : index
    %c0_0 = arith.constant 0 : index
    %c0_1 = arith.constant 0 : index
    %0 = vector.load %arg1[%c0, %c0_0, %c0_1] : memref<2x8x48xf32, #tpu.memory_space<vmem>>, vector<2x8x48xf32>
    %1 = vector.shape_cast %0 : vector<2x8x48xf32> to vector<16x48xf32>
    %2 = arith.truncf %1 : vector<16x48xf32> to vector<16x48xbf16>
    %c0_2 = arith.constant 0 : index
    %c0_3 = arith.constant 0 : index
    %3 = vector.load %arg2[%c0_2, %c0_3] : memref<48x384xbf16, #tpu.memory_space<vmem>>, vector<48x384xbf16>
    %cst = arith.constant dense<0.000000e+00> : vector<16x384xf32>
    %4 = tpu.matmul %2, %3, %cst {dimension_numbers = #tpu.dot_dimension_numbers<[1], [0], [0], [1], [0, 0, 1, 1], [], []>} : vector<16x48xbf16>, vector<48x384xbf16>, vector<16x384xf32> -> vector<16x384xf32>
    %c0_4 = arith.constant 0 : index
    %c0_5 = arith.constant 0 : index
    %5 = vector.load %arg3[%c0_4, %c0_5] : memref<1x384xf32, #tpu.memory_space<vmem>>, vector<1x384xf32>
    %6 = vector.shape_cast %5 : vector<1x384xf32> to vector<384xf32>
    %7 = vector.shape_cast %6 : vector<384xf32> to vector<1x384xf32>
    %8 = vector.broadcast %7 : vector<1x384xf32> to vector<16x384xf32>
    %9 = arith.addf %4, %8 : vector<16x384xf32>
    %10 = tpu.iota {dimensions = array<i32: 0>} : vector<8x8xi32>
    %11 = tpu.iota {dimensions = array<i32: 1>} : vector<8x8xi32>
    %12 = arith.cmpi sle, %11, %10 : vector<8x8xi32>
    %cst_6 = arith.constant 0.000000e+00 : f32
    %cst_7 = arith.constant -1.000000e+30 : f32
    %13 = vector.broadcast %cst_6 : f32 to vector<8x8xf32>
    %14 = vector.broadcast %cst_7 : f32 to vector<8x8xf32>
    %15 = arith.select %12, %13, %14 : vector<8x8xi1>, vector<8x8xf32>
    %cst_8 = arith.constant 0.000000e+00 : f32
    %16 = vector.broadcast %cst_8 : f32 to vector<16x128xf32>
    %c0_9 = arith.constant 0 : index
    %c0_10 = arith.constant 0 : index
    %17 = vector.load %arg5[%c0_9, %c0_10] : memref<1x128xf32, #tpu.memory_space<vmem>>, vector<1x128xf32>
    %18 = vector.shape_cast %17 : vector<1x128xf32> to vector<128xf32>
    %19 = vector.shape_cast %18 : vector<128xf32> to vector<1x128xf32>
    %20 = vector.broadcast %19 : vector<1x128xf32> to vector<16x128xf32>
    %21 = arith.addf %16, %20 : vector<16x128xf32>
    %22 = vector.extract_strided_slice %9 {offsets = [0, 0], sizes = [16, 16], strides = [1, 1]} : vector<16x384xf32> to vector<16x16xf32>
    %23 = vector.shape_cast %22 : vector<16x16xf32> to vector<2x8x16xf32>
    %24 = vector.extract_strided_slice %9 {offsets = [0, 128], sizes = [16, 16], strides = [1, 1]} : vector<16x384xf32> to vector<16x16xf32>
    %25 = vector.shape_cast %24 : vector<16x16xf32> to vector<2x8x16xf32>
    %26 = vector.extract_strided_slice %9 {offsets = [0, 256], sizes = [16, 16], strides = [1, 1]} : vector<16x384xf32> to vector<16x16xf32>
    %27 = vector.shape_cast %26 : vector<16x16xf32> to vector<2x8x16xf32>
    "tpu.trace_start"() <{level = 10 : i32, message = "bqd,bkd->bqk"}> : () -> ()
    %cst_11 = arith.constant dense<0.000000e+00> : vector<2x8x8xf32>
    %28 = tpu.matmul %23, %25, %cst_11 {dimension_numbers = #tpu.dot_dimension_numbers<[2], [2], [1], [1], [0, 0, 0, 1, 1, 1], [0], [0]>} : vector<2x8x16xf32>, vector<2x8x16xf32>, vector<2x8x8xf32> -> vector<2x8x8xf32>
    "tpu.trace_stop"() : () -> ()
    %cst_12 = arith.constant 2.500000e-01 : f32
    %29 = vector.broadcast %cst_12 : f32 to vector<2x8x8xf32>
    %30 = arith.mulf %28, %29 : vector<2x8x8xf32>
    %31 = vector.shape_cast %15 : vector<8x8xf32> to vector<1x8x8xf32>
    %32 = vector.broadcast %31 : vector<1x8x8xf32> to vector<2x8x8xf32>
    %33 = arith.addf %30, %32 : vector<2x8x8xf32>
    %cst_13 = arith.constant dense<0xFF800000> : vector<2x8xf32>
    %34 = vector.multi_reduction <maximumf>, %33, %cst_13 [2] : vector<2x8x8xf32> to vector<2x8xf32>
    %35 = vector.shape_cast %34 : vector<2x8xf32> to vector<2x8x1xf32>
    %36 = vector.broadcast %35 : vector<2x8x1xf32> to vector<2x8x8xf32>
    %37 = arith.subf %33, %36 : vector<2x8x8xf32>
    %38 = math.exp %37 : vector<2x8x8xf32>
    %cst_14 = arith.constant dense<0.000000e+00> : vector<2x8xf32>
    %39 = vector.multi_reduction <add>, %38, %cst_14 [2] : vector<2x8x8xf32> to vector<2x8xf32>
    %40 = vector.shape_cast %39 : vector<2x8xf32> to vector<2x8x1xf32>
    %41 = tpu.reciprocal %40 {approx = true} : vector<2x8x1xf32> -> vector<2x8x1xf32>
    %42 = vector.broadcast %41 : vector<2x8x1xf32> to vector<2x8x8xf32>
    %43 = arith.mulf %38, %42 : vector<2x8x8xf32>
    "tpu.trace_start"() <{level = 10 : i32, message = "bqk,bkd->bqd"}> : () -> ()
    %cst_15 = arith.constant dense<0.000000e+00> : vector<2x8x16xf32>
    %44 = tpu.matmul %43, %27, %cst_15 {dimension_numbers = #tpu.dot_dimension_numbers<[2], [1], [1], [2], [0, 0, 0, 1, 1, 2], [0], [0]>} : vector<2x8x8xf32>, vector<2x8x16xf32>, vector<2x8x16xf32> -> vector<2x8x16xf32>
    "tpu.trace_stop"() : () -> ()
    %45 = vector.shape_cast %44 : vector<2x8x16xf32> to vector<16x16xf32>
    %46 = arith.truncf %45 : vector<16x16xf32> to vector<16x16xbf16>
    %c0_16 = arith.constant 0 : index
    %c0_17 = arith.constant 0 : index
    %c0_18 = arith.constant 0 : index
    %47 = vector.load %arg4[%c0_16, %c0_17, %c0_18] : memref<3x16x128xbf16, #tpu.memory_space<vmem>>, vector<1x16x128xbf16>
    %48 = vector.shape_cast %47 : vector<1x16x128xbf16> to vector<16x128xbf16>
    %cst_19 = arith.constant dense<0.000000e+00> : vector<16x128xf32>
    %49 = tpu.matmul %46, %48, %cst_19 {dimension_numbers = #tpu.dot_dimension_numbers<[1], [0], [0], [1], [0, 0, 1, 1], [], []>} : vector<16x16xbf16>, vector<16x128xbf16>, vector<16x128xf32> -> vector<16x128xf32>
    %50 = arith.addf %21, %49 : vector<16x128xf32>
    %51 = vector.extract_strided_slice %9 {offsets = [0, 16], sizes = [16, 16], strides = [1, 1]} : vector<16x384xf32> to vector<16x16xf32>
    %52 = vector.shape_cast %51 : vector<16x16xf32> to vector<2x8x16xf32>
    %53 = vector.extract_strided_slice %9 {offsets = [0, 144], sizes = [16, 16], strides = [1, 1]} : vector<16x384xf32> to vector<16x16xf32>
    %54 = vector.shape_cast %53 : vector<16x16xf32> to vector<2x8x16xf32>
    %55 = vector.extract_strided_slice %9 {offsets = [0, 272], sizes = [16, 16], strides = [1, 1]} : vector<16x384xf32> to vector<16x16xf32>
    %56 = vector.shape_cast %55 : vector<16x16xf32> to vector<2x8x16xf32>
    "tpu.trace_start"() <{level = 10 : i32, message = "bqd,bkd->bqk"}> : () -> ()
    %cst_20 = arith.constant dense<0.000000e+00> : vector<2x8x8xf32>
    %57 = tpu.matmul %52, %54, %cst_20 {dimension_numbers = #tpu.dot_dimension_numbers<[2], [2], [1], [1], [0, 0, 0, 1, 1, 1], [0], [0]>} : vector<2x8x16xf32>, vector<2x8x16xf32>, vector<2x8x8xf32> -> vector<2x8x8xf32>
    "tpu.trace_stop"() : () -> ()
    %cst_21 = arith.constant 2.500000e-01 : f32
    %58 = vector.broadcast %cst_21 : f32 to vector<2x8x8xf32>
    %59 = arith.mulf %57, %58 : vector<2x8x8xf32>
    %60 = vector.shape_cast %15 : vector<8x8xf32> to vector<1x8x8xf32>
    %61 = vector.broadcast %60 : vector<1x8x8xf32> to vector<2x8x8xf32>
    %62 = arith.addf %59, %61 : vector<2x8x8xf32>
    %cst_22 = arith.constant dense<0xFF800000> : vector<2x8xf32>
    %63 = vector.multi_reduction <maximumf>, %62, %cst_22 [2] : vector<2x8x8xf32> to vector<2x8xf32>
    %64 = vector.shape_cast %63 : vector<2x8xf32> to vector<2x8x1xf32>
    %65 = vector.broadcast %64 : vector<2x8x1xf32> to vector<2x8x8xf32>
    %66 = arith.subf %62, %65 : vector<2x8x8xf32>
    %67 = math.exp %66 : vector<2x8x8xf32>
    %cst_23 = arith.constant dense<0.000000e+00> : vector<2x8xf32>
    %68 = vector.multi_reduction <add>, %67, %cst_23 [2] : vector<2x8x8xf32> to vector<2x8xf32>
    %69 = vector.shape_cast %68 : vector<2x8xf32> to vector<2x8x1xf32>
    %70 = tpu.reciprocal %69 {approx = true} : vector<2x8x1xf32> -> vector<2x8x1xf32>
    %71 = vector.broadcast %70 : vector<2x8x1xf32> to vector<2x8x8xf32>
    %72 = arith.mulf %67, %71 : vector<2x8x8xf32>
    "tpu.trace_start"() <{level = 10 : i32, message = "bqk,bkd->bqd"}> : () -> ()
    %cst_24 = arith.constant dense<0.000000e+00> : vector<2x8x16xf32>
    %73 = tpu.matmul %72, %56, %cst_24 {dimension_numbers = #tpu.dot_dimension_numbers<[2], [1], [1], [2], [0, 0, 0, 1, 1, 2], [0], [0]>} : vector<2x8x8xf32>, vector<2x8x16xf32>, vector<2x8x16xf32> -> vector<2x8x16xf32>
    "tpu.trace_stop"() : () -> ()
    %74 = vector.shape_cast %73 : vector<2x8x16xf32> to vector<16x16xf32>
    %75 = arith.truncf %74 : vector<16x16xf32> to vector<16x16xbf16>
    %c1 = arith.constant 1 : index
    %c0_25 = arith.constant 0 : index
    %c0_26 = arith.constant 0 : index
    %76 = vector.load %arg4[%c1, %c0_25, %c0_26] : memref<3x16x128xbf16, #tpu.memory_space<vmem>>, vector<1x16x128xbf16>
    %77 = vector.shape_cast %76 : vector<1x16x128xbf16> to vector<16x128xbf16>
    %cst_27 = arith.constant dense<0.000000e+00> : vector<16x128xf32>
    %78 = tpu.matmul %75, %77, %cst_27 {dimension_numbers = #tpu.dot_dimension_numbers<[1], [0], [0], [1], [0, 0, 1, 1], [], []>} : vector<16x16xbf16>, vector<16x128xbf16>, vector<16x128xf32> -> vector<16x128xf32>
    %79 = arith.addf %50, %78 : vector<16x128xf32>
    %80 = vector.extract_strided_slice %9 {offsets = [0, 32], sizes = [16, 16], strides = [1, 1]} : vector<16x384xf32> to vector<16x16xf32>
    %81 = vector.shape_cast %80 : vector<16x16xf32> to vector<2x8x16xf32>
    %82 = vector.extract_strided_slice %9 {offsets = [0, 160], sizes = [16, 16], strides = [1, 1]} : vector<16x384xf32> to vector<16x16xf32>
    %83 = vector.shape_cast %82 : vector<16x16xf32> to vector<2x8x16xf32>
    %84 = vector.extract_strided_slice %9 {offsets = [0, 288], sizes = [16, 16], strides = [1, 1]} : vector<16x384xf32> to vector<16x16xf32>
    %85 = vector.shape_cast %84 : vector<16x16xf32> to vector<2x8x16xf32>
    "tpu.trace_start"() <{level = 10 : i32, message = "bqd,bkd->bqk"}> : () -> ()
    %cst_28 = arith.constant dense<0.000000e+00> : vector<2x8x8xf32>
    %86 = tpu.matmul %81, %83, %cst_28 {dimension_numbers = #tpu.dot_dimension_numbers<[2], [2], [1], [1], [0, 0, 0, 1, 1, 1], [0], [0]>} : vector<2x8x16xf32>, vector<2x8x16xf32>, vector<2x8x8xf32> -> vector<2x8x8xf32>
    "tpu.trace_stop"() : () -> ()
    %cst_29 = arith.constant 2.500000e-01 : f32
    %87 = vector.broadcast %cst_29 : f32 to vector<2x8x8xf32>
    %88 = arith.mulf %86, %87 : vector<2x8x8xf32>
    %89 = vector.shape_cast %15 : vector<8x8xf32> to vector<1x8x8xf32>
    %90 = vector.broadcast %89 : vector<1x8x8xf32> to vector<2x8x8xf32>
    %91 = arith.addf %88, %90 : vector<2x8x8xf32>
    %cst_30 = arith.constant dense<0xFF800000> : vector<2x8xf32>
    %92 = vector.multi_reduction <maximumf>, %91, %cst_30 [2] : vector<2x8x8xf32> to vector<2x8xf32>
    %93 = vector.shape_cast %92 : vector<2x8xf32> to vector<2x8x1xf32>
    %94 = vector.broadcast %93 : vector<2x8x1xf32> to vector<2x8x8xf32>
    %95 = arith.subf %91, %94 : vector<2x8x8xf32>
    %96 = math.exp %95 : vector<2x8x8xf32>
    %cst_31 = arith.constant dense<0.000000e+00> : vector<2x8xf32>
    %97 = vector.multi_reduction <add>, %96, %cst_31 [2] : vector<2x8x8xf32> to vector<2x8xf32>
    %98 = vector.shape_cast %97 : vector<2x8xf32> to vector<2x8x1xf32>
    %99 = tpu.reciprocal %98 {approx = true} : vector<2x8x1xf32> -> vector<2x8x1xf32>
    %100 = vector.broadcast %99 : vector<2x8x1xf32> to vector<2x8x8xf32>
    %101 = arith.mulf %96, %100 : vector<2x8x8xf32>
    "tpu.trace_start"() <{level = 10 : i32, message = "bqk,bkd->bqd"}> : () -> ()
    %cst_32 = arith.constant dense<0.000000e+00> : vector<2x8x16xf32>
    %102 = tpu.matmul %101, %85, %cst_32 {dimension_numbers = #tpu.dot_dimension_numbers<[2], [1], [1], [2], [0, 0, 0, 1, 1, 2], [0], [0]>} : vector<2x8x8xf32>, vector<2x8x16xf32>, vector<2x8x16xf32> -> vector<2x8x16xf32>
    "tpu.trace_stop"() : () -> ()
    %103 = vector.shape_cast %102 : vector<2x8x16xf32> to vector<16x16xf32>
    %104 = arith.truncf %103 : vector<16x16xf32> to vector<16x16xbf16>
    %c2 = arith.constant 2 : index
    %c0_33 = arith.constant 0 : index
    %c0_34 = arith.constant 0 : index
    %105 = vector.load %arg4[%c2, %c0_33, %c0_34] : memref<3x16x128xbf16, #tpu.memory_space<vmem>>, vector<1x16x128xbf16>
    %106 = vector.shape_cast %105 : vector<1x16x128xbf16> to vector<16x128xbf16>
    %cst_35 = arith.constant dense<0.000000e+00> : vector<16x128xf32>
    %107 = tpu.matmul %104, %106, %cst_35 {dimension_numbers = #tpu.dot_dimension_numbers<[1], [0], [0], [1], [0, 0, 1, 1], [], []>} : vector<16x16xbf16>, vector<16x128xbf16>, vector<16x128xf32> -> vector<16x128xf32>
    %108 = arith.addf %79, %107 : vector<16x128xf32>
    %109 = vector.shape_cast %108 : vector<16x128xf32> to vector<2x8x128xf32>
    %c0_36 = arith.constant 0 : index
    %c0_37 = arith.constant 0 : index
    %c0_38 = arith.constant 0 : index
    %110 = vector.load %arg6[%c0_36, %c0_37, %c0_38] : memref<2x8x128xf32, #tpu.memory_space<vmem>>, vector<2x8x128xf32>
    tpu.vector_store %arg6[%c0_36, %c0_37, %c0_38], %109 {strides = array<i32>} : memref<2x8x128xf32, #tpu.memory_space<vmem>>, vector<2x8x128xf32>,
    return
  }
  func.func @transform_0(%arg0: i32) -> (i32, i32, i32) {
    %c0_i32 = arith.constant 0 : i32
    %c0_i32_0 = arith.constant 0 : i32
    %c0_i32_1 = arith.constant 0 : i32
    return %arg0, %c0_i32, %c0_i32_0 : i32, i32, i32
  }
  func.func @transform_1(%arg0: i32) -> (i32, i32) {
    %c0_i32 = arith.constant 0 : i32
    %c0_i32_0 = arith.constant 0 : i32
    %c0_i32_1 = arith.constant 0 : i32
    return %c0_i32, %c0_i32_0 : i32, i32
  }
  func.func @transform_2(%arg0: i32) -> (i32, i32) {
    %c0_i32 = arith.constant 0 : i32
    %c0_i32_0 = arith.constant 0 : i32
    %c0_i32_1 = arith.constant 0 : i32
    return %c0_i32, %c0_i32_0 : i32, i32
  }
  func.func @transform_3(%arg0: i32) -> (i32, i32, i32) {
    %c0_i32 = arith.constant 0 : i32
    %c0_i32_0 = arith.constant 0 : i32
    %c0_i32_1 = arith.constant 0 : i32
    %c0_i32_2 = arith.constant 0 : i32
    return %c0_i32, %c0_i32_0, %c0_i32_1 : i32, i32, i32
  }
  func.func @transform_4(%arg0: i32) -> (i32, i32) {
    %c0_i32 = arith.constant 0 : i32
    %c0_i32_0 = arith.constant 0 : i32
    %c0_i32_1 = arith.constant 0 : i32
    return %c0_i32, %c0_i32_0 : i32, i32
  }
  func.func @transform_5(%arg0: i32) -> (i32, i32, i32) {
    %c0_i32 = arith.constant 0 : i32
    %c0_i32_0 = arith.constant 0 : i32
    %c0_i32_1 = arith.constant 0 : i32
    return %arg0, %c0_i32, %c0_i32_0 : i32, i32, i32
  }
}

</mosaic_0001>

<bundles_post_ra>
// kernel: multi_head_attention.1
= control target key start
LH: loop header
LB: loop body
LE: loop exit
PB: predicated region body
PF: predicated region fallthrough
CT: control target
= control target key end

     0   :  { %10 = vsyncpa [#allocation3], 0  ;;  %s1926_s0 = inlined_call_operand.hbm [shape: f32[2,8,48], index: 0, kind: input, shape index: {}]   ;;  %s1927_s1 = inlined_call_operand.hbm [shape: bf16[48,384], index: 1, kind: input, shape index: {}]   ;;  %s1928_s2 = inlined_call_operand.vmem [shape: f32[1,384], index: 2, kind: input, shape index: {}]   ;;  %s1929_s3 = inlined_call_operand.hbm [shape: bf16[3,16,128], index: 3, kind: input, shape index: {}]   ;;  %s1930_s4 = inlined_call_operand.vmem [shape: f32[1,128], index: 4, kind: input, shape index: {}]   ;;  %s1931_s5 = inlined_call_operand.hbm [shape: f32[2,8,128], index: 5, kind: output, shape index: {}]  }
   0x1   :  { %11 = vsyncpa [#allocation6], 0 }
   0x2   :  { %12 = vsyncpa [#allocation4], 0  ;;  %s1727_s18 = smov [#allocation5]  }
   0x3   :  { %s30_s19 = sshll.u32 %s1727_s18, 4  ;;  %s31_s19 = int_to_ptr.vmem [resolvable:$true] %s30_s19 }
   0x4   :  { %s1649_s20 = scalar_lea.vmem %s31_s19, 1152  ;;  %p1654_p1 = scmp.lt.s32.totalorder %s31_s19, %s31_s19 }
   0x5   :  { %p1650_p0 = scmp.ne.s32.totalorder %s31_s19, %s1649_s20  ;;  %p1655_p2 = scmp.lt.s32.totalorder %s1649_s20, %s1649_s20 }
   0x7   :  { %p1656_p3 = por %p1655_p2, %p1654_p1 }
   0x9   :  { %p1657_p4 = pnand %p1656_p3, %p1650_p0 }
   0xb   :  { %1660 = shalt.err (!%p1657_p4)
}
   0xc   :  { %s1728_s21 = smov 192   ;;  %s1729_s22 = smov 12  }
   0xd   :  { %36 = dma.hbm_to_vmem [thread:$0]  %s1927_s1, 1152, %s31_s19, [#allocation6], %s1728_s21, %s1728_s21, %s1729_s22  }
   0xe   :  { %s1730_s25 = smov [#allocation2]  }
   0xf   :  { %s18_s26 = sshll.u32 %s1730_s25, 4  ;;  %s19_s26 = int_to_ptr.vmem [resolvable:$true] %s18_s26 }
  0x10   :  { %s1669_s27 = scalar_lea.vmem %s19_s26, 256  ;;  %p1674_p6 = scmp.lt.s32.totalorder %s19_s26, %s19_s26 }
  0x11   :  { %p1670_p5 = scmp.ne.s32.totalorder %s19_s26, %s1669_s27  ;;  %p1675_p7 = scmp.lt.s32.totalorder %s1669_s27, %s1669_s27 }
  0x13   :  { %p1676_p8 = por %p1675_p7, %p1674_p6 }
  0x15   :  { %p1677_p9 = pnand %p1676_p8, %p1670_p5 }
  0x17   :  { %1680 = shalt.err (!%p1677_p9)
}
  0x18   :  { %s1731_s28 = smov 128   ;;  %s1732_s29 = smov 8  }
  0x19   :  { %24 = dma.hbm_to_vmem [thread:$0]  %s1926_s0, 256, %s19_s26, [#allocation3], %s1731_s28, %s1731_s28, %s1732_s29  }
  0x1a   :  { %s1733_s1 = smov [#allocation7]  }
  0x1b   :  { %s44_s7 = sshll.u32 %s1733_s1, 4  ;;  %s45_s7 = int_to_ptr.vmem [resolvable:$true] %s44_s7 }
  0x1c   :  { %s1689_s8 = scalar_lea.vmem %s45_s7, 384  ;;  %p1694_p11 = scmp.lt.s32.totalorder %s45_s7, %s45_s7 }
  0x1d   :  { %p1690_p10 = scmp.ne.s32.totalorder %s45_s7, %s1689_s8  ;;  %p1695_p12 = scmp.lt.s32.totalorder %s1689_s8, %s1689_s8 }
  0x1f   :  { %p1696_p13 = por %p1695_p12, %p1694_p11 }
  0x21   :  { %p1697_p0 = pnand %p1696_p13, %p1690_p10 }
  0x23   :  { %1700 = shalt.err (!%p1697_p0)
}
  0x24   :  { %s1734_s9 = smov 64   ;;  %s1735_s10 = smov 4  }
  0x25   :  { %50 = dma.hbm_to_vmem [thread:$0]  %s1929_s3, 384, %s45_s7, [#allocation6], %s1734_s9, %s1734_s9, %s1735_s10  }
  0x26   :  { %1721 = dma.done.wait [#allocation3], 256  }
  0x27   :  { %1722 = vsyncadd [#allocation3], 4294967040 }
  0x28   :  { %1723 = dma.done.wait [#allocation6], 1536  }
  0x29   :  { %1724 = vsyncadd [#allocation6], 4294965760  ;;  %v1736_v0 = vmov 0   ;;  %v1737_v1 = vmov 0.0   ;;  %vm1738_vm0 = vmmov 0   ;;  %v63_v9 = vld [vmem:[#allocation2] sm:$0xff]  ;;  %v80_v14 = vlaneseq }
  0x2a   :  { %179 = vmatprep.mubr.bf16.mxu0 %v1736_v0  ;;  %1498 = vmatprep.subr.bf16.mxu1 %v1737_v1  ;;  %v1602_v2 = vld [vmem:[#allocation5 + $0x34] ss:$12 sps:$4 sm:$0xff]   ;;  %v1604_v3 = vld [vmem:[#allocation5 + $0x30] ss:$12 sps:$4 sm:$0xff]   ;;  %v1607_v5 = vld [vmem:[#allocation5 + $0x18] ss:$12 sps:$4 sm:$0xff]  }
  0x2b   :  { %1504 = vmatprep.mubr.msk.bf16.mxu1 %vm1738_vm0, %v1737_v1  ;;  %157 = vmatprep.subr.bf16.mxu0 %v1602_v2  ;;  %v1605_v4 = vld [vmem:[#allocation5 + $0x1c] ss:$12 sps:$4 sm:$0xff]   ;;  %v1608_v6 = vld [vmem:[#allocation5 + $0x4] ss:$12 sps:$4 sm:$0xff]   ;;  %v1610_v7 = vld [vmem:[#allocation5] ss:$12 sps:$4 sm:$0xff]  }
  0x2c   :  { %158 = vmatpush1.bf16.msra.mxu0 %v1604_v3  ;;  %v1611_v8 = vld [vmem:[#allocation5 + $0x38] ss:$12 sps:$4 sm:$0xff]   ;;  %v1612_v11 = vld [vmem:[#allocation5 + $0x20] ss:$12 sps:$4 sm:$0xff]   ;;  %vm143_vm1 = vcmask 392192   ;;  %v81_v15 = vshrl.u32 %v80_v14, 7 }
  0x2d   :  { %159 = vmatprep.subr.bf16.mxu0 %v1605_v4  ;;  %v64_v10 = vld [vmem:[#allocation2 + $0x8] sm:$0xff]  ;;  %1499 = vmatpush3.bf16.msra.mxu1 %v1611_v8  ;;  %v1613_v13 = vld [vmem:[#allocation5 + $0x8] ss:$12 sps:$4 sm:$0xff]   ;;  %v78_v17 = vld [vmem:[%s1928_s2] sm:$0x7]  ;;  %vm245_vm2 = vcmask 130048  }
  0x2e   :  { %1500 = vmatprep.subr.bf16.mxu1 %v1737_v1  ;;  %v65_v12 = vpack.c.bf16 %v64_v10, %v63_v9  ;;  %v86_v16 = vsub.s32 1, %v81_v15  ;;  %v82_v18 = vsub.s32 0, %v81_v15  ;;  %v90_v20 = vsub.s32 2, %v81_v15  ;;  %s1739_s13 = smov 112   ;;  %s1741_s2 = smov 96   ;;  %v1614_v8 = vld [vmem:[#allocation7] sm:$0xff]  }
  0x2f   :  { %v234_v37 = vand.u32 127, %v80_v14  ;;  %v1740_v39 = vmov -1e+30   ;;  %vm402_vm4 = vcmask 64512  }
  0x30   :  { %160 = vmatpush1.bf16.msra.mxu0 %v1607_v5  ;;  %v87_v19 = vrot.slane %v78_v17, %v86_v16  ;;  %v91_v22 = vrot.slane %v78_v17, %v90_v20  ;;  %v83_v23 = vrot.slane %v78_v17, %v82_v18 }
  0x31   :  { %161 = vmatprep.subr.bf16.mxu0 %v1608_v6  ;;  %1501 = vmatpush3.bf16.msra.mxu1 %v1612_v11  ;;  %vm235_vm3 = vcmp.le.s32.totalorder %v234_v37, %v81_v15 }
  0x32   :  { %1502 = vmatprep.subr.bf16.mxu1 %v1737_v1  ;;  %v1828_v40 = vsel %vm235_vm3, 0.0, %v1740_v39 }
  0x34   :  { %162 = vmatpush1.bf16.msra.mxu0 %v1610_v7 }
  0x35   :  { %1518 = vmatprep.subr.mxu0 %v1737_v1  ;;  %1503 = vmatpush3.bf16.msra.mxu1 %v1613_v13 }
  0x36   :  { %1508 = vmatprep.subr.mxu1 %v1737_v1 }
  0x37   :  { %1437 = vmatmul.mubr.msk.bf16.vlgmr.msra.gmra.mxu0 %vm143_vm1, %v65_v12 }
  0x38   :  { %1520 = vmatprep.mubr.msk.f32.mxu0 %vm1738_vm0, %v1737_v1  ;;  %1505 = vmatmul.mubr.msk.bf16.vlgmr.msra.gmra.mxu1 %vm143_vm1, %v65_v12 }
  0x39   :  { %1510 = vmatprep.mubr.msk.f32.mxu1 %vm1738_vm0, %v1737_v1 }
  0xf7   :  { %v181_v21 = vpop.f32.mrf.mxu0 }
  0xf8   :  { %v224_v27 = vpop.f32.mrf.mxu1  ;;  %v182_v29 = vadd.f32 %v181_v21, %v83_v23 }
  0xf9   :  { %v183_v24 = vpop.f32.mrf.mxu0  ;;  %v1805_v28 = vadd.f32 %v224_v27, %v91_v22 }
  0xfa   :  { %v1799_v25 = vadd.f32 %v183_v24, %v87_v19  ;;  %v1506_v31 = vpop.f32.mrf.mxu1 }
  0xfb   :  { %v185_v26 = vpop.f32.mrf.mxu0  ;;  %1519 = vmatpush3.msra.mxu0 %v1805_v28 }
  0xfc   :  { %628 = vrot.lane.b32.xlu1 %v1799_v25, %s1739_s13  ;;  %1509 = vmatpush3.xpose.msk.msra.mxu1 %vm245_vm2, %v1799_v25  ;;  %v227_v33 = vpop.f32.mrf.mxu1  ;;  %v1815_v35 = vadd.f32 %v185_v26, %v83_v23 }
  0xfd   :  { %v187_v30 = vpop.f32.mrf.mxu0  ;;  %1513 = vmatprep.subr.mxu1 %v1737_v1  ;;  %1528 = vmatprep.subr.bf16.mxu0 %v1737_v1  ;;  %v1813_v34 = vadd.f32 %v227_v33, %v91_v22 }
  0xfe   :  { %v188_v32 = vadd.f32 %v187_v30, %v87_v19  ;;  %v1507_v36 = vpop.f32.mrf.mxu1 }
  0xff   :  { %1511 = vmatmul.mubr.msk.f32.vlgmr.msra.gmra.mxu1 %vm245_vm2, %v182_v29 }
 0x100   :  { %626 = vrot.lane.b32.xlu1 %v182_v29, %s1739_s13  ;;  %1514 = vmatpush3.xpose.msk.msra.mxu1 %vm245_vm2, %v188_v32 }
 0x101   :  { %1515 = vmatprep.mubr.msk.f32.mxu1 %vm1738_vm0, %v1737_v1  ;;  %1523 = vmatprep.subr.mxu1 %v1737_v1 }
 0x103   :  { %1516 = vmatmul.mubr.msk.f32.vlgmr.msra.gmra.mxu1 %vm245_vm2, %v1815_v35 }
 0x104   :  { %704 = vrot.lane.b32.xlu1 %v1815_v35, %s1739_s13  ;;  %1524 = vmatpush3.msra.mxu1 %v1813_v34 }
 0x105   :  { %1525 = vmatprep.mubr.msk.f32.mxu1 %vm1738_vm0, %v1737_v1  ;;  %1534 = vmatprep.subr.mxu1 %v1737_v1 }
 0x16e   :  { %v629_v50 = vpop.permute.xlu1 %628 }
 0x172   :  { %v627_v51 = vpop.permute.xlu1 %626 }
 0x176   :  { %v705_v52 = vpop.permute.xlu1 %704 }
 0x1bf   :  { %v318_v38 = vpop.f32.mrf.mxu1 }
 0x1c0   :  { %v398_v41 = vmul.f32 0.25, %v318_v38 }
 0x1c1   :  { %v1512_v42 = vpop.f32.mrf.mxu1 }
 0x1c2   :  { %v400_v43 = vadd.f32 %v398_v41, %v1828_v40 }
 0x1c3   :  { %v394_v44 = vpop.f32.mrf.mxu1 }
 0x1c4   :  { %v399_v45 = vmul.f32 0.25, %v394_v44  ;;  %v403_v46 = vsel %vm402_vm4, %v400_v43, -inf }
 0x1c5   :  { %404 = vmax.xlane.f32.xlu1 %v403_v46  ;;  %v1517_v47 = vpop.f32.mrf.mxu1 }
 0x1c6   :  { %v401_v48 = vadd.f32 %v399_v45, %v1828_v40 }
 0x1c8   :  { %v406_v49 = vsel %vm402_vm4, %v401_v48, -inf }
 0x1c9   :  { %407 = vmax.xlane.f32.xlu0 %v406_v49 }
 0x24e   :  { %v405_v53 = vpop.xlane.xlu1 %404 }
 0x24f   :  { %v409_v54 = vsub.f32 %v400_v43, %v405_v53 }
 0x251   :  { %v411_v55 = vmul.f32 1.442695, %v409_v54 }
 0x252   :  { %v408_v56 = vpop.xlane.xlu0 %407 }
 0x253   :  { %1617 = vpow2.f32 %v411_v55  ;;  %v410_v57 = vsub.f32 %v401_v48, %v408_v56 }
 0x255   :  { %v413_v58 = vmul.f32 1.442695, %v410_v57 }
 0x257   :  { %1619 = vpow2.f32 %v413_v58 }
 0x260   :  { %v1618_v59 = vpop.eup %1617 }
 0x261   :  { %v415_v60 = vsel %vm402_vm4, %v1618_v59, 0.0 }
 0x262   :  { %416 = vadd.xlane.f32.xlu1 %v415_v60 }
 0x264   :  { %v1620_v61 = vpop.eup %1619 }
 0x265   :  { %v418_v62 = vsel %vm402_vm4, %v1620_v61, 0.0 }
 0x266   :  { %419 = vadd.xlane.f32.xlu0 %v418_v62 }
 0x273   :  { %886 = vrot.lane.b32.xlu1 %v1813_v34, %s1739_s13 }
 0x277   :  { %1018 = vrot.lane.b32.xlu1 %v182_v29, %s1741_s2 }
 0x27b   :  { %1098 = vrot.lane.b32.xlu1 %v188_v32, %s1741_s2 }
 0x27c   :  { %706 = vrot.lane.b32.xlu0 %v188_v32, %s1739_s13 }
 0x2eb   :  { %v417_v63 = vpop.xlane.xlu1 %416 }
 0x2ec   :  { %1621 = vrcp.f32 %v417_v63 }
 0x2ef   :  { %v420_v0 = vpop.xlane.xlu0 %419  ;;  %v887_v7 = vpop.permute.xlu1 %886 }
 0x2f0   :  { %1623 = vrcp.f32 %v420_v0 }
 0x2f3   :  { %v707_v6 = vpop.permute.xlu0 %706 }
 0x2f9   :  { %v1622_v2 = vpop.eup %1621 }
 0x2fa   :  { %v423_v3 = vmul.f32 %v1622_v2, %v1618_v59 }
 0x2fc   :  { %1521 = vmatmul.mubr.msk.f32.vlgmr.msra.gmra.mxu0 %vm402_vm4, %v423_v3 }
 0x2fd   :  { %v1624_v4 = vpop.eup %1623  ;;  %1530 = vmatprep.mubr.msk.bf16.mxu0 %vm1738_vm0, %v1737_v1  ;;  %1529 = vmatpush3.bf16.msra.mxu0 %v1614_v8 }
 0x2fe   :  { %v424_v5 = vmul.f32 %v1624_v4, %v1620_v61  ;;  %1544 = vmatprep.subr.mxu0 %v1737_v1 }
 0x300   :  { %1526 = vmatmul.mubr.msk.f32.vlgmr.msra.gmra.mxu1 %vm402_vm4, %v424_v5 }
 0x301   :  { %1535 = vmatpush3.xpose.msk.msra.mxu1 %vm245_vm2, %v629_v50  ;;  %1536 = vmatprep.mubr.msk.f32.mxu1 %vm1738_vm0, %v1737_v1 }
 0x302   :  { %1539 = vmatprep.subr.mxu1 %v1737_v1 }
 0x304   :  { %1537 = vmatmul.mubr.msk.f32.vlgmr.msra.gmra.mxu1 %vm245_vm2, %v627_v51  ;;  %v1615_v51 = vld [vmem:[#allocation7 + $0x8] sm:$0xff]  }
 0x305   :  { %1540 = vmatpush3.xpose.msk.msra.mxu1 %vm245_vm2, %v707_v6  ;;  %1541 = vmatprep.mubr.msk.f32.mxu1 %vm1738_vm0, %v1737_v1 }
 0x306   :  { %1549 = vmatprep.subr.mxu1 %v1737_v1 }
 0x308   :  { %1542 = vmatmul.mubr.msk.f32.vlgmr.msra.gmra.mxu1 %vm245_vm2, %v705_v52 }
 0x309   :  { %1550 = vmatpush3.msra.mxu1 %v887_v7  ;;  %1551 = vmatprep.mubr.msk.f32.mxu1 %vm1738_vm0, %v1737_v1 }
 0x30a   :  { %1560 = vmatprep.subr.mxu1 %v1737_v1 }
 0x3bc   :  { %v494_v9 = vpop.f32.mrf.mxu0 }
 0x3be   :  { %v1522_v10 = vpop.f32.mrf.mxu0 }
 0x3c0   :  { %v567_v11 = vpop.f32.mrf.mxu1 }
 0x3c1   :  { %v571_v12 = vpack.c.bf16 %v567_v11, %v494_v9 }
 0x3c2   :  { %v1527_v13 = vpop.f32.mrf.mxu1 }
 0x3c3   :  { %1531 = vmatmul.mubr.msk.bf16.vlgmr.msra.gmra.mxu0 %vm245_vm2, %v571_v12 }
 0x3c4   :  { %v700_v14 = vpop.f32.mrf.mxu1  ;;  %1546 = vmatprep.mubr.msk.f32.mxu0 %vm1738_vm0, %v1737_v1 }
 0x3c5   :  { %v782_v21 = vmul.f32 0.25, %v700_v14  ;;  %v1439_v14 = vld [vmem:[%s1930_s4] ss:$0 sm:$0xff]  ;;  %s1742_s4 = smov [#allocation8]  }
 0x3c6   :  { %v1538_v15 = vpop.f32.mrf.mxu1  ;;  %s1415_s16 = sshll.u32 %s1742_s4, 4  ;;  %s1416_s16 = int_to_ptr.vmem [resolvable:$true] %s1415_s16 }
 0x3c7   :  { %v784_v22 = vadd.f32 %v782_v21, %v1828_v40  ;;  %s1701_s17 = scalar_lea.vmem %s1416_s16, 256  ;;  %p1706_p2 = scmp.lt.s32.totalorder %s1416_s16, %s1416_s16 }
 0x3c8   :  { %v778_v16 = vpop.f32.mrf.mxu1  ;;  %p1702_p1 = scmp.ne.s32.totalorder %s1416_s16, %s1701_s17  ;;  %p1707_p3 = scmp.lt.s32.totalorder %s1701_s17, %s1701_s17 }
 0x3c9   :  { %v783_v17 = vmul.f32 0.25, %v778_v16  ;;  %v786_v23 = vsel %vm402_vm4, %v784_v22, -inf }
 0x3ca   :  { %v1543_v18 = vpop.f32.mrf.mxu1  ;;  %p1708_p4 = por %p1707_p3, %p1706_p2 }
 0x3cb   :  { %v785_v19 = vadd.f32 %v783_v17, %v1828_v40 }
 0x3cc   :  { %p1709_p5 = pnand %p1708_p4, %p1702_p1 }
 0x3cd   :  { %v789_v20 = vsel %vm402_vm4, %v785_v19, -inf }
 0x3ce   :  { %790 = vmax.xlane.f32.xlu0 %v789_v20 }
 0x3e4   :  { %1020 = vrot.lane.b32.xlu0 %v1799_v25, %s1741_s2 }
 0x403   :  { %787 = vmax.xlane.f32.xlu0 %v786_v23 }
 0x419   :  { %809 = vrot.lane.b32.xlu0 %v1805_v28, %s1739_s13 }
 0x41d   :  { %1200 = vrot.lane.b32.xlu0 %v1805_v28, %s1741_s2 }
 0x457   :  { %v791_v24 = vpop.xlane.xlu0 %790 }
 0x458   :  { %v793_v26 = vsub.f32 %v785_v19, %v791_v24 }
 0x45a   :  { %v796_v27 = vmul.f32 1.442695, %v793_v26 }
 0x45b   :  { %v1021_v33 = vpop.permute.xlu0 %1020 }
 0x45c   :  { %1625 = vpow2.f32 %v796_v27 }
 0x469   :  { %v1626_v29 = vpop.eup %1625 }
 0x46a   :  { %v801_v30 = vsel %vm402_vm4, %v1626_v29, 0.0 }
 0x46b   :  { %802 = vadd.xlane.f32.xlu1 %v801_v30 }
 0x47c   :  { %1096 = vrot.lane.b32.xlu1 %v1815_v35, %s1741_s2  ;;  %v1019_v35 = vpop.permute.xlu1 %1018 }
 0x480   :  { %v1099_v43 = vpop.permute.xlu1 %1098 }
 0x483   :  { %v1875_v25 = vpop.f32.mrf.mxu0 }
 0x484   :  { %v624_v15 = vadd.f32 %v1439_v14, %v1875_v25  ;;  %v1616_v25 = vld [vmem:[#allocation7 + $0x10] sm:$0xff]  }
 0x485   :  { %v1532_v31 = vpop.f32.mrf.mxu0 }
 0x487   :  { %v1877_v32 = vpop.f32.mrf.mxu0 }
 0x488   :  { %v625_v19 = vadd.f32 %v1439_v14, %v1877_v32 }
 0x489   :  { %v1533_v36 = vpop.f32.mrf.mxu0 }
 0x48c   :  { %v788_v37 = vpop.xlane.xlu0 %787 }
 0x48d   :  { %v792_v28 = vsub.f32 %v784_v22, %v788_v37 }
 0x48f   :  { %v794_v38 = vmul.f32 1.442695, %v792_v28 }
 0x490   :  { %v810_v39 = vpop.permute.xlu0 %809 }
 0x491   :  { %1627 = vpow2.f32 %v794_v38  ;;  %1545 = vmatpush3.msra.mxu0 %v810_v39 }
 0x492   :  { %1554 = vmatprep.subr.bf16.mxu0 %v1737_v1 }
 0x494   :  { %v1201_v4 = vpop.permute.xlu0 %1200 }
 0x49e   :  { %v1628_v41 = vpop.eup %1627 }
 0x49f   :  { %v798_v42 = vsel %vm402_vm4, %v1628_v41, 0.0 }
 0x4a0   :  { %799 = vadd.xlane.f32.xlu1 %v798_v42 }
 0x4f4   :  { %v803_v44 = vpop.xlane.xlu1 %802 }
 0x4f5   :  { %1629 = vrcp.f32 %v803_v44 }
 0x4f8   :  { %v1097_v47 = vpop.permute.xlu1 %1096 }
 0x502   :  { %v1630_v45 = vpop.eup %1629 }
 0x503   :  { %v807_v46 = vmul.f32 %v1630_v45, %v1626_v29 }
 0x505   :  { %1552 = vmatmul.mubr.msk.f32.vlgmr.msra.gmra.mxu1 %vm402_vm4, %v807_v46 }
 0x506   :  { %1561 = vmatpush3.xpose.msk.msra.mxu1 %vm245_vm2, %v1021_v33  ;;  %1562 = vmatprep.mubr.msk.f32.mxu1 %vm1738_vm0, %v1737_v1 }
 0x507   :  { %1565 = vmatprep.subr.mxu1 %v1737_v1 }
 0x509   :  { %1563 = vmatmul.mubr.msk.f32.vlgmr.msra.gmra.mxu1 %vm245_vm2, %v1019_v35 }
 0x50a   :  { %1566 = vmatpush3.xpose.msk.msra.mxu1 %vm245_vm2, %v1099_v43  ;;  %1567 = vmatprep.mubr.msk.f32.mxu1 %vm1738_vm0, %v1737_v1 }
 0x50b   :  { %1575 = vmatprep.subr.mxu1 %v1737_v1 }
 0x50d   :  { %1568 = vmatmul.mubr.msk.f32.vlgmr.msra.gmra.mxu1 %vm245_vm2, %v1097_v47 }
 0x50e   :  { %1577 = vmatprep.mubr.msk.f32.mxu1 %vm1738_vm0, %v1737_v1 }
 0x529   :  { %v800_v48 = vpop.xlane.xlu1 %799 }
 0x52a   :  { %1631 = vrcp.f32 %v800_v48 }
 0x537   :  { %v1632_v49 = vpop.eup %1631 }
 0x538   :  { %v806_v50 = vmul.f32 %v1632_v49, %v1628_v41 }
 0x53a   :  { %1547 = vmatmul.mubr.msk.f32.vlgmr.msra.gmra.mxu0 %vm402_vm4, %v806_v50 }
 0x53b   :  { %1556 = vmatprep.mubr.msk.bf16.mxu0 %vm1738_vm0, %v1737_v1  ;;  %1555 = vmatpush3.bf16.msra.mxu0 %v1615_v51 }
 0x53c   :  { %1570 = vmatprep.subr.mxu0 %v1737_v1 }
 0x5c5   :  { %v958_v52 = vpop.f32.mrf.mxu1 }
 0x5c7   :  { %v1553_v53 = vpop.f32.mrf.mxu1 }
 0x5c9   :  { %v1092_v54 = vpop.f32.mrf.mxu1 }
 0x5ca   :  { %v1174_v55 = vmul.f32 0.25, %v1092_v54 }
 0x5cb   :  { %v1564_v56 = vpop.f32.mrf.mxu1 }
 0x5cc   :  { %v1176_v57 = vadd.f32 %v1174_v55, %v1828_v40 }
 0x5cd   :  { %v1170_v58 = vpop.f32.mrf.mxu1 }
 0x5ce   :  { %v1175_v59 = vmul.f32 0.25, %v1170_v58  ;;  %v1178_v60 = vsel %vm402_vm4, %v1176_v57, -inf }
 0x5cf   :  { %1179 = vmax.xlane.f32.xlu1 %v1178_v60  ;;  %v1569_v61 = vpop.f32.mrf.mxu1 }
 0x5d0   :  { %v1177_v62 = vadd.f32 %v1175_v59, %v1828_v40 }
 0x5d2   :  { %v1181_v63 = vsel %vm402_vm4, %v1177_v62, -inf }
 0x5d3   :  { %1182 = vmax.xlane.f32.xlu1 %v1181_v63 }
 0x5fa   :  { %v881_v0 = vpop.f32.mrf.mxu0 }
 0x5fb   :  { %v962_v2 = vpack.c.bf16 %v958_v52, %v881_v0 }
 0x5fc   :  { %v1548_v3 = vpop.f32.mrf.mxu0 }
 0x5fd   :  { %1557 = vmatmul.mubr.msk.bf16.vlgmr.msra.gmra.mxu0 %vm245_vm2, %v962_v2 }
 0x5fe   :  { %1571 = vmatpush3.msra.mxu0 %v1201_v4  ;;  %1572 = vmatprep.mubr.msk.f32.mxu0 %vm1738_vm0, %v1737_v1 }
 0x5ff   :  { %1580 = vmatprep.subr.bf16.mxu0 %v1737_v1 }
 0x658   :  { %v1180_v5 = vpop.xlane.xlu1 %1179 }
 0x659   :  { %v1184_v6 = vsub.f32 %v1176_v57, %v1180_v5 }
 0x65b   :  { %v1186_v7 = vmul.f32 1.442695, %v1184_v6 }
 0x65c   :  { %v1183_v8 = vpop.xlane.xlu1 %1182 }
 0x65d   :  { %1633 = vpow2.f32 %v1186_v7  ;;  %v1185_v40 = vsub.f32 %v1177_v62, %v1183_v8 }
 0x65f   :  { %v1188_v9 = vmul.f32 1.442695, %v1185_v40 }
 0x661   :  { %1635 = vpow2.f32 %v1188_v9 }
 0x66a   :  { %v1634_v10 = vpop.eup %1633 }
 0x66b   :  { %v1190_v11 = vsel %vm402_vm4, %v1634_v10, 0.0 }
 0x66c   :  { %1191 = vadd.xlane.f32.xlu1 %v1190_v11 }
 0x66e   :  { %v1636_v12 = vpop.eup %1635 }
 0x66f   :  { %v1193_v13 = vsel %vm402_vm4, %v1636_v12, 0.0 }
 0x670   :  { %1194 = vadd.xlane.f32.xlu1 %v1193_v13 }
 0x681   :  { %1276 = vrot.lane.b32.xlu1 %v1813_v34, %s1741_s2 }
 0x6bd   :  { %v1009_v16 = vpop.f32.mrf.mxu0 }
 0x6be   :  { %v1016_v17 = vadd.f32 %v1009_v16, %v624_v15 }
 0x6bf   :  { %v1558_v18 = vpop.f32.mrf.mxu0 }
 0x6c1   :  { %v1012_v20 = vpop.f32.mrf.mxu0 }
 0x6c2   :  { %v1017_v21 = vadd.f32 %v1012_v20, %v625_v19 }
 0x6c3   :  { %v1559_v22 = vpop.f32.mrf.mxu0 }
 0x6f5   :  { %v1192_v23 = vpop.xlane.xlu1 %1191 }
 0x6f6   :  { %1637 = vrcp.f32 %v1192_v23 }
 0x6f9   :  { %v1195_v24 = vpop.xlane.xlu1 %1194 }
 0x6fa   :  { %1639 = vrcp.f32 %v1195_v24 }
 0x6fd   :  { %v1277_v26 = vpop.permute.xlu1 %1276 }
 0x6fe   :  { %1576 = vmatpush3.msra.mxu1 %v1277_v26 }
 0x703   :  { %v1638_v34 = vpop.eup %1637 }
 0x704   :  { %v1198_v27 = vmul.f32 %v1638_v34, %v1634_v10 }
 0x706   :  { %1573 = vmatmul.mubr.msk.f32.vlgmr.msra.gmra.mxu0 %vm402_vm4, %v1198_v27 }
 0x707   :  { %v1640_v29 = vpop.eup %1639  ;;  %1582 = vmatprep.mubr.msk.bf16.mxu0 %vm1738_vm0, %v1737_v1  ;;  %1581 = vmatpush3.bf16.msra.mxu0 %v1616_v25 }
 0x708   :  { %v1199_v30 = vmul.f32 %v1640_v29, %v1636_v12 }
 0x70a   :  { %1578 = vmatmul.mubr.msk.f32.vlgmr.msra.gmra.mxu1 %vm402_vm4, %v1199_v30 }
 0x7c6   :  { %v1272_v31 = vpop.f32.mrf.mxu0 }
 0x7c8   :  { %v1574_v32 = vpop.f32.mrf.mxu0 }
 0x7ca   :  { %v1348_v33 = vpop.f32.mrf.mxu1 }
 0x7cb   :  { %v1352_v36 = vpack.c.bf16 %v1348_v33, %v1272_v31 }
 0x7cc   :  { %v1579_v37 = vpop.f32.mrf.mxu1 }
 0x7cd   :  { %1583 = vmatmul.mubr.msk.bf16.vlgmr.msra.gmra.mxu0 %vm245_vm2, %v1352_v36 }
 0x88d   :  { %v1399_v28 = vpop.f32.mrf.mxu0 }
 0x88e   :  { %v1406_v38 = vadd.f32 %v1399_v28, %v1016_v17 }
 0x88f   :  { %v1584_v39 = vpop.f32.mrf.mxu0 }
 0x890   :  { %1408 = vst [vmem:[#allocation8] sm:$0xff] %v1406_v38 }
 0x891   :  { %v1402_v41 = vpop.f32.mrf.mxu0 }
 0x892   :  { %v1407_v1 = vadd.f32 %v1402_v41, %v1017_v21 }
 0x893   :  { %v1585_v42 = vpop.f32.mrf.mxu0 }
 0x894   :  { %1409 = vst [vmem:[#allocation8 + $0x8] sm:$0xff] %v1407_v1 }
 0x895   :  { %1712 = shalt.err (!%p1709_p5)
}
 0x896   :  { %1421 = dma.vmem_to_hbm [thread:$0]  %s1416_s16, 256, %s1931_s5, [#allocation4], %s1731_s28, %s1731_s28, %s1732_s29  }
 0x897   :  { %1725 = dma.done.wait [#allocation4], 256  }
 0x898   :  { %1726 = vsyncadd [#allocation4], 4294967040 }
 0x899   :  { %1425 = vsyncpa [#allocation3], 1 }
 0x89a   :  { %1426 = vsyncpa [#allocation6], 1 }
 0x89b   :  { %1427 = vsyncpa [#allocation4], 1 }

</bundles_post_ra>
